<compile_context>
chip_gen: v7x
topology: tpu7x:2x2x1
jax: 0.10.0
libtpu: 0.0.40
codegen_flags: <defaults>
</compile_context>

<pallas_src>
import math

import jax
import jax.numpy as jnp
from jax import lax
from jax.experimental import pallas as pl
from jax.experimental.pallas import tpu as pltpu

NUM_LABELS_N_MASKS = 5   # number of "n-masks" labels (synthetic choice)
MASK_HIDDEN = 50         # fixed by the module definition
_HID_PAD = 128           # MASK_HIDDEN zero-padded to a full lane tile
_OUT_PAD = 8             # NUM_LABELS_N_MASKS zero-padded to a full sublane tile


def _gelu_exact(x):
    # x * 0.5 * (1 + erf(x / sqrt(2)))  -- matches the torch reference formula
    return x * 0.5 * (1.0 + lax.erf(x / math.sqrt(2.0)))


def _mask_head_kernel(x_ref, w1_ref, b1_ref, w2t_ref, b2_ref, out_ref):
    # x_ref:   (TM, H)   caller dtype (bf16 preferred upstream; cast is then a no-op)
    # w1_ref:  (H, 128)  bf16        b1_ref: (1, 128)  f32
    # w2t_ref: (8, 128)  bf16        b2_ref: (8, 1)    f32
    # out_ref: (8, TM)   f32   (transposed, lane-dense output)
    x = x_ref[...].astype(jnp.bfloat16)
    h = jnp.dot(x, w1_ref[...], preferred_element_type=jnp.float32) + b1_ref[...]
    h = _gelu_exact(h)                       # (TM, 128) f32; padded cols stay 0
    # TODO(synk): if a v5e bundle dump shows the erf polynomial (VALU) binding
    # ahead of the x DMA once activations arrive as bf16, switch to tanh-GELU
    # (EUP slot) — kept exact-erf here to match the torch formula.
    # y^T = W2^T @ h^T  -> contract both operands on their last (lane) dim;
    # the MXU handles the transposed-RHS matmul, no materialized transpose.
    y_t = lax.dot_general(w2t_ref[...], h.astype(jnp.bfloat16),
                          (((1,), (1,)), ((), ())),
                          preferred_element_type=jnp.float32)
    out_ref[...] = (y_t + b2_ref[...]).astype(out_ref.dtype)


def _round_up(x, m):
    return ((x + m - 1) // m) * m


def mask_n_prediction_head(sequence_output, w1, b1, w2, b2, *, row_tile=None):
    """sequence_output: [B, S, H].  w1:[H,50] b1:[1,50] w2:[50,L] b2:[1,L].
    Returns [B, S, NUM_LABELS_N_MASKS] float32."""
    B, S, H = sequence_output.shape
    L = w2.shape[1]
    M = B * S
    x2d = sequence_output.reshape(M, H)
    x_itemsize = x2d.dtype.itemsize

    if row_tile is None:
        # Largest power-of-two tile <= 2048 rows whose double-buffered x DMA
        # stays <= 16 MiB (keeps per-grid-step overhead small on v6e/v7x while
        # the total budget below remains < 32 MiB -> safe on v7x's 64 MiB VMEM).
        row_tile = 2048
        while row_tile > 128 and 2 * row_tile * H * x_itemsize > (16 << 20):
            row_tile //= 2
    assert row_tile % 128 == 0, "row_tile must be a multiple of 128"
    # Don't use a tile bigger than the (128-rounded) problem.
    row_tile = min(row_tile, _round_up(M, 128))

    n_blocks = pl.cdiv(M, row_tile)
    if n_blocks == 1:
        if M > 128:
            # Ensure >= 2 grid steps so "parallel" can shard rows across the
            # two v7x TensorCores (no-op / harmless on v5e / v6e).
            row_tile = _round_up(pl.cdiv(M, 2), 128)
            n_blocks = pl.cdiv(M, row_tile)
        elif M < 128:
            # Tiny problem: use a single full-array block (no padding needed).
            row_tile = M
    # Output slab padded to whole blocks (8 rows of f32 -> negligible extra HBM);
    # x itself is never padded — the last x block simply overruns and the
    # garbage tail columns are sliced off below.
    out_cols = n_blocks * row_tile

    # Pad / transpose the tiny weights once in the wrapper (negligible).
    w1p = jnp.zeros((H, _HID_PAD), jnp.bfloat16).at[:, :MASK_HIDDEN].set(
        w1.astype(jnp.bfloat16))
    b1p = jnp.zeros((1, _HID_PAD), jnp.float32).at[:, :MASK_HIDDEN].set(
        b1.astype(jnp.float32).reshape(1, MASK_HIDDEN))
    w2t = jnp.zeros((_OUT_PAD, _HID_PAD), jnp.bfloat16).at[:L, :MASK_HIDDEN].set(
        w2.T.astype(jnp.bfloat16))
    b2p = jnp.zeros((_OUT_PAD, 1), jnp.float32).at[:L, 0].set(
        b2.reshape(-1).astype(jnp.float32))

    # Explicit scoped-VMEM budget for this tile choice (portable v5e/v6e/v7x).
    vmem_bytes = (
        2 * row_tile * H * x_itemsize                      # x tiles, double-buffered
        + row_tile * H * 2                                 # in-kernel bf16 copy of x tile
        + 2 * _OUT_PAD * row_tile * 4                      # out tiles, double-buffered
        + 2 * (H * _HID_PAD * 2 + _HID_PAD * 4             # W1(bf16), b1(f32), x2 buffers
               + _OUT_PAD * _HID_PAD * 2 + _OUT_PAD * 4)   # W2^T(bf16), b2(f32), x2 buffers
        + row_tile * _HID_PAD * (4 + 2)                    # live h (f32) + h (bf16)
        + _OUT_PAD * row_tile * 4                          # live y^T (f32)
    )
    # Floor at v5e's scoped default; cap well under v7x's 64 MiB physical VMEM.
    vmem_limit = min(max(int(vmem_bytes * 1.3) + (2 << 20), 16 << 20), 48 << 20)

    out_t = pl.pallas_call(
        _mask_head_kernel,
        out_shape=jax.ShapeDtypeStruct((_OUT_PAD, out_cols), jnp.float32),
        grid_spec=pltpu.PrefetchScalarGridSpec(
            num_scalar_prefetch=0,
            grid=(n_blocks,),
            in_specs=[
                pl.BlockSpec((row_tile, H), lambda i: (i, 0)),         # x rows (pipelined)
                pl.BlockSpec((H, _HID_PAD), lambda i: (0, 0)),         # W1 padded, bf16
                pl.BlockSpec((1, _HID_PAD), lambda i: (0, 0)),         # b1 padded, f32
                pl.BlockSpec((_OUT_PAD, _HID_PAD), lambda i: (0, 0)),  # W2^T padded, bf16
                pl.BlockSpec((_OUT_PAD, 1), lambda i: (0, 0)),         # b2 column, f32
            ],
            out_specs=pl.BlockSpec((_OUT_PAD, row_tile), lambda i: (0, i)),
        ),
        compiler_params=pltpu.CompilerParams(
            dimension_semantics=("parallel",),
            vmem_limit_bytes=vmem_limit,
        ),
    )(x2d, w1p, b1p, w2t, b2p)

    # Strip padding, undo the lane-dense transpose (tiny: L * M elements).
    # Invariant: columns >= M of out_t contain garbage from the overrun tail
    # rows and must never be used except through this slice.
    return out_t[:L, :M].T.reshape(B, S, L)


def _ref_forward(x, w1, b1, w2, b2):
    h = jnp.einsum("bsh,ho->bso", x, w1) + b1[0]
    h = _gelu_exact(h)
    return jnp.einsum("bso,ol->bsl", h, w2) + b2[0]


if __name__ == "__main__":
    def run_case(B, S, H, x_dtype, key):
        k_x, k_w1, k_b1, k_w2, k_b2 = jax.random.split(key, 5)
        x = jax.random.normal(k_x, (B, S, H), dtype=jnp.float32).astype(x_dtype)
        w1 = jax.random.normal(k_w1, (H, MASK_HIDDEN), dtype=jnp.float32) * 0.05
        b1 = jax.random.normal(k_b1, (1, MASK_HIDDEN), dtype=jnp.float32) * 0.01
        w2 = jax.random.normal(k_w2, (MASK_HIDDEN, NUM_LABELS_N_MASKS),
                               dtype=jnp.float32) * 0.05
        b2 = jax.random.normal(k_b2, (1, NUM_LABELS_N_MASKS), dtype=jnp.float32) * 0.01

        out = jax.block_until_ready(mask_n_prediction_head(x, w1, b1, w2, b2))
        ref = _ref_forward(x.astype(jnp.float32), w1, b1, w2, b2)
        assert out.shape == (B, S, NUM_LABELS_N_MASKS)
        # bf16 MXU operands (f32 accumulation) vs pure-f32 reference -> loose tol.
        assert jnp.allclose(out, ref, atol=3e-2, rtol=3e-2), "mismatch vs JAX reference"

    key = jax.random.PRNGKey(0)
    k1, k2, k3 = jax.random.split(key, 3)
    run_case(2, 8, 32, jnp.float32, k1)       # tiny spec shape: single full-array block
    run_case(3, 100, 64, jnp.float32, k2)     # M=300: non-divisible M, overrun last block
    run_case(4, 256, 256, jnp.bfloat16, k3)   # bf16 activations, grid=(2,) pipelined path
    print("KERNEL_OK")
</pallas_src>

<mosaic_0001>
module attributes {stable_mosaic.version = 11 : i64} {
  func.func @_mask_head_kernel(%arg0: i32, %arg1: memref<16x32xf32, #tpu.memory_space<vmem>>, %arg2: memref<32x128xbf16, #tpu.memory_space<vmem>>, %arg3: memref<1x128xf32, #tpu.memory_space<vmem>>, %arg4: memref<8x128xbf16, #tpu.memory_space<vmem>>, %arg5: memref<8x1xf32, #tpu.memory_space<vmem>>, %arg6: memref<8x16xf32, #tpu.memory_space<vmem>>) attributes {dimension_semantics = [#tpu.dimension_semantics<parallel>], iteration_bounds = array<i64: 1>, scalar_prefetch = 0 : i64, scratch_operands = 0 : i64, tpu.core_type = #tpu.core_type<tc>, window_params = [{transform_indices = @transform_0, window_bounds = array<i64: 16, 32>}, {pipeline_mode = #tpu.pipeline_mode<synchronous>, transform_indices = @transform_1, window_bounds = array<i64: 32, 128>}, {pipeline_mode = #tpu.pipeline_mode<synchronous>, transform_indices = @transform_2, window_bounds = array<i64: 1, 128>}, {pipeline_mode = #tpu.pipeline_mode<synchronous>, transform_indices = @transform_3, window_bounds = array<i64: 8, 128>}, {pipeline_mode = #tpu.pipeline_mode<synchronous>, transform_indices = @transform_4, window_bounds = array<i64: 8, 1>}, {transform_indices = @transform_5, window_bounds = array<i64: 8, 16>}]} {
    %c0 = arith.constant 0 : index
    %c0_0 = arith.constant 0 : index
    %0 = vector.load %arg1[%c0, %c0_0] : memref<16x32xf32, #tpu.memory_space<vmem>>, vector<16x32xf32>
    %1 = arith.truncf %0 : vector<16x32xf32> to vector<16x32xbf16>
    %c0_1 = arith.constant 0 : index
    %c0_2 = arith.constant 0 : index
    %2 = vector.load %arg2[%c0_1, %c0_2] : memref<32x128xbf16, #tpu.memory_space<vmem>>, vector<32x128xbf16>
    %cst = arith.constant dense<0.000000e+00> : vector<16x128xf32>
    %3 = tpu.matmul %1, %2, %cst {dimension_numbers = #tpu.dot_dimension_numbers<[1], [0], [0], [1], [0, 0, 1, 1], [], []>} : vector<16x32xbf16>, vector<32x128xbf16>, vector<16x128xf32> -> vector<16x128xf32>
    %c0_3 = arith.constant 0 : index
    %c0_4 = arith.constant 0 : index
    %4 = vector.load %arg3[%c0_3, %c0_4] : memref<1x128xf32, #tpu.memory_space<vmem>>, vector<1x128xf32>
    %5 = vector.broadcast %4 : vector<1x128xf32> to vector<16x128xf32>
    %6 = arith.addf %3, %5 : vector<16x128xf32>
    %cst_5 = arith.constant 5.000000e-01 : f32
    %7 = vector.broadcast %cst_5 : f32 to vector<16x128xf32>
    %8 = arith.mulf %6, %7 : vector<16x128xf32>
    %cst_6 = arith.constant 1.41421354 : f32
    %9 = vector.broadcast %cst_6 : f32 to vector<16x128xf32>
    %10 = arith.divf %6, %9 : vector<16x128xf32>
    %11 = math.erf %10 : vector<16x128xf32>
    %cst_7 = arith.constant 1.000000e+00 : f32
    %12 = vector.broadcast %cst_7 : f32 to vector<16x128xf32>
    %13 = arith.addf %12, %11 : vector<16x128xf32>
    %14 = arith.mulf %8, %13 : vector<16x128xf32>
    %c0_8 = arith.constant 0 : index
    %c0_9 = arith.constant 0 : index
    %15 = vector.load %arg4[%c0_8, %c0_9] : memref<8x128xbf16, #tpu.memory_space<vmem>>, vector<8x128xbf16>
    %16 = arith.truncf %14 : vector<16x128xf32> to vector<16x128xbf16>
    %cst_10 = arith.constant dense<0.000000e+00> : vector<8x16xf32>
    %17 = tpu.matmul %15, %16, %cst_10 {dimension_numbers = #tpu.dot_dimension_numbers<[1], [1], [0], [0], [0, 0, 1, 0], [], []>} : vector<8x128xbf16>, vector<16x128xbf16>, vector<8x16xf32> -> vector<8x16xf32>
    %c0_11 = arith.constant 0 : index
    %c0_12 = arith.constant 0 : index
    %18 = vector.load %arg5[%c0_11, %c0_12] : memref<8x1xf32, #tpu.memory_space<vmem>>, vector<8x1xf32>
    %19 = vector.broadcast %18 : vector<8x1xf32> to vector<8x16xf32>
    %20 = arith.addf %17, %19 : vector<8x16xf32>
    %c0_13 = arith.constant 0 : index
    %c0_14 = arith.constant 0 : index
    %21 = vector.load %arg6[%c0_13, %c0_14] : memref<8x16xf32, #tpu.memory_space<vmem>>, vector<8x16xf32>
    tpu.vector_store %arg6[%c0_13, %c0_14], %20 {strides = array<i32>} : memref<8x16xf32, #tpu.memory_space<vmem>>, vector<8x16xf32>,
    return
  }
  func.func @transform_0(%arg0: i32) -> (i32, i32) {
    %c0_i32 = arith.constant 0 : i32
    %c0_i32_0 = arith.constant 0 : i32
    return %arg0, %c0_i32 : i32, i32
  }
  func.func @transform_1(%arg0: i32) -> (i32, i32) {
    %c0_i32 = arith.constant 0 : i32
    %c0_i32_0 = arith.constant 0 : i32
    %c0_i32_1 = arith.constant 0 : i32
    return %c0_i32, %c0_i32_0 : i32, i32
  }
  func.func @transform_2(%arg0: i32) -> (i32, i32) {
    %c0_i32 = arith.constant 0 : i32
    %c0_i32_0 = arith.constant 0 : i32
    %c0_i32_1 = arith.constant 0 : i32
    return %c0_i32, %c0_i32_0 : i32, i32
  }
  func.func @transform_3(%arg0: i32) -> (i32, i32) {
    %c0_i32 = arith.constant 0 : i32
    %c0_i32_0 = arith.constant 0 : i32
    %c0_i32_1 = arith.constant 0 : i32
    return %c0_i32, %c0_i32_0 : i32, i32
  }
  func.func @transform_4(%arg0: i32) -> (i32, i32) {
    %c0_i32 = arith.constant 0 : i32
    %c0_i32_0 = arith.constant 0 : i32
    %c0_i32_1 = arith.constant 0 : i32
    return %c0_i32, %c0_i32_0 : i32, i32
  }
  func.func @transform_5(%arg0: i32) -> (i32, i32) {
    %c0_i32 = arith.constant 0 : i32
    %c0_i32_0 = arith.constant 0 : i32
    return %c0_i32, %arg0 : i32, i32
  }
}

</mosaic_0001>

<bundles_post_ra>
// kernel: tpu_custom_call.1
= control target key start
LH: loop header
LB: loop body
LE: loop exit
PB: predicated region body
PF: predicated region fallthrough
CT: control target
= control target key end

     0   :  { %10 = vsyncpa [#allocation3], 0  ;;  %s395_s0 = inlined_call_operand.hbm [shape: f32[16,32], index: 0, kind: input, shape index: {}]   ;;  %s396_s1 = inlined_call_operand.hbm [shape: bf16[32,128], index: 1, kind: input, shape index: {}]   ;;  %s397_s2 = inlined_call_operand.vmem [shape: f32[1,128], index: 2, kind: input, shape index: {}]   ;;  %s398_s3 = inlined_call_operand.vmem [shape: bf16[8,128], index: 3, kind: input, shape index: {}]   ;;  %s399_s4 = inlined_call_operand.vmem [shape: f32[8,1], index: 4, kind: input, shape index: {}]   ;;  %s400_s5 = inlined_call_operand.hbm [shape: f32[8,16], index: 5, kind: output, shape index: {}]  }
   0x1   :  { %11 = vsyncpa [#allocation6], 0 }
   0x2   :  { %12 = vsyncpa [#allocation4], 0  ;;  %s310_s18 = smov [#allocation2]   ;;  %s238_s22 = scalar_lea.hbm %s395_s0, 256 }
   0x3   :  { %s18_s19 = sshll.u32 %s310_s18, 4  ;;  %p239_p0 = scmp.ne.s32.totalorder %s395_s0, %s238_s22  ;;  %s19_s19 = int_to_ptr.vmem [resolvable:$true] %s18_s19 }
   0x4   :  { %p242_p1 = scmp.lt.u32.totalorder %s238_s22, %s395_s0 }
   0x6   :  { %p244_p2 = pnand %p242_p1, %p239_p0 }
   0x8   :  { %247 = shalt.err (!%p244_p2)
}
   0x9   :  { %s248_s27 = scalar_lea.vmem %s19_s19, 256  ;;  %p253_p4 = scmp.lt.s32.totalorder %s19_s19, %s19_s19 }
   0xa   :  { %p249_p3 = scmp.ne.s32.totalorder %s19_s19, %s248_s27  ;;  %p254_p5 = scmp.lt.s32.totalorder %s248_s27, %s248_s27 }
   0xc   :  { %p255_p6 = por %p254_p5, %p253_p4 }
   0xe   :  { %p256_p7 = pnand %p255_p6, %p249_p3 }
  0x10   :  { %259 = shalt.err (!%p256_p7)
}
  0x11   :  { %s311_s28 = smov 128   ;;  %s312_s29 = smov 8  }
  0x12   :  { %24 = dma.hbm_to_vmem [thread:$0]  %s395_s0, 256, %s19_s19, [#allocation3], %s311_s28, %s311_s28, %s312_s29  }
  0x13   :  { %s313_s7 = smov [#allocation5]   ;;  %s260_s11 = scalar_lea.hbm %s396_s1, 256 }
  0x14   :  { %s30_s8 = sshll.u32 %s313_s7, 4  ;;  %p261_p8 = scmp.ne.s32.totalorder %s396_s1, %s260_s11  ;;  %s31_s8 = int_to_ptr.vmem [resolvable:$true] %s30_s8 }
  0x15   :  { %p264_p9 = scmp.lt.u32.totalorder %s260_s11, %s396_s1 }
  0x17   :  { %p266_p10 = pnand %p264_p9, %p261_p8 }
  0x19   :  { %269 = shalt.err (!%p266_p10)
}
  0x1a   :  { %s270_s16 = scalar_lea.vmem %s31_s8, 256  ;;  %p275_p12 = scmp.lt.s32.totalorder %s31_s8, %s31_s8 }
  0x1b   :  { %p271_p11 = scmp.ne.s32.totalorder %s31_s8, %s270_s16  ;;  %p276_p13 = scmp.lt.s32.totalorder %s270_s16, %s270_s16 }
  0x1d   :  { %p277_p0 = por %p276_p13, %p275_p12 }
  0x1f   :  { %p278_p1 = pnand %p277_p0, %p271_p11 }
  0x21   :  { %281 = shalt.err (!%p278_p1)
}
  0x22   :  { %s314_s0 = smov 64   ;;  %s315_s17 = smov 4  }
  0x23   :  { %36 = dma.hbm_to_vmem [thread:$0]  %s396_s1, 256, %s31_s8, [#allocation6], %s314_s0, %s314_s0, %s315_s17  }
  0x24   :  { %304 = dma.done.wait [#allocation3], 256  }
  0x25   :  { %305 = vsyncadd [#allocation3], 4294967040 }
  0x26   :  { %306 = dma.done.wait [#allocation6], 256  }
  0x27   :  { %307 = vsyncadd [#allocation6], 4294967040  ;;  %v316_v0 = vmov 0.0   ;;  %vm317_vm0 = vmmov 0   ;;  %v232_v1 = vld [vmem:[#allocation5] sm:$0xff]   ;;  %v233_v2 = vld [vmem:[#allocation5 + $0x8] sm:$0xff]  }
  0x28   :  { %207 = vmatprep.subr.bf16.mxu0 %v316_v0  ;;  %211 = vmatprep.mubr.msk.bf16.mxu0 %vm317_vm0, %v316_v0  ;;  %v50_v3 = vld [vmem:[#allocation2] sm:$0xff]  ;;  %v51_v4 = vld [vmem:[#allocation2 + $0x8] sm:$0xff]  ;;  %vm76_vm1 = vcmask 261120   ;;  %v318_v7 = vmov 0   ;;  %s319_s23 = smov [#allocation7]   ;;  %vm180_vm2 = vcmask 130048  }
  0x29   :  { %215 = vmatprep.subr.bf16.mxu1 %v316_v0  ;;  %217 = vmatprep.mubr.msk.bf16.mxu1 %vm317_vm0, %v316_v0  ;;  %v52_v5 = vpack.c.bf16 %v51_v4, %v50_v3  ;;  %v134_v6 = vld [vmem:[%s399_s4] sm:$0xff]  ;;  %s188_s24 = sshll.u32 %s319_s23, 4  ;;  %s189_s24 = int_to_ptr.vmem [resolvable:$true] %s188_s24 }
  0x2a   :  { %208 = vmatpush3.bf16.msra.mxu0 %v232_v1  ;;  %231 = vset.pattern.permute.xlu0 %v318_v7  ;;  %v198_v8 = vld [vmem:[%s397_s2] ss:$0 sm:$0xff]  ;;  %s282_s25 = scalar_lea.vmem %s189_s24, 128  ;;  %p287_p3 = scmp.lt.s32.totalorder %s189_s24, %s189_s24 }
  0x2b   :  { %209 = vmatprep.subr.bf16.mxu0 %v316_v0  ;;  %137 = vperm.xlu0 %231, %v134_v6   ;;  %v132_v26 = vld [vmem:[%s398_s3] sm:$0xf]  ;;  %p283_p2 = scmp.ne.s32.totalorder %s189_s24, %s282_s25  ;;  %p288_p4 = scmp.lt.s32.totalorder %s282_s25, %s282_s25 }
  0x2d   :  { %p289_p5 = por %p288_p4, %p287_p3 }
  0x2e   :  { %210 = vmatpush3.bf16.msra.mxu0 %v233_v2 }
  0x2f   :  { %p290_p6 = pnand %p289_p5, %p283_p2 }
  0x31   :  { %212 = vmatmul.mubr.msk.bf16.vlgmr.msra.gmra.mrb[0].mxu0 %vm76_vm1, %v52_v5 }
  0xaa   :  { %v138_v27 = vpop.permute.xlu0 %137 }
 0x104   :  { %v114_v9 = vpop.f32.mrb[0].mxu0 }
 0x105   :  { %v115_v10 = vadd.f32 %v198_v8, %v114_v9  ;;  %v213_v11 = vpop.f32.mrb[1].mxu0 }
 0x106   :  { %v117_v12 = vpop.f32.mrb[2].mxu0 }
 0x107   :  { %v124_v13 = vmul.f32 0.70710677, %v115_v10  ;;  %v118_v14 = vadd.f32 %v198_v8, %v117_v12  ;;  %v214_v15 = vpop.f32.mrb[3].mxu0  ;;  %v121_v20 = vmul.f32 0.5, %v115_v10 }
 0x109   :  { %234 = verf.f32 %v124_v13  ;;  %v125_v16 = vmul.f32 0.70710677, %v118_v14  ;;  %v122_v21 = vmul.f32 0.5, %v118_v14 }
 0x10b   :  { %236 = verf.f32 %v125_v16 }
 0x113   :  { %v235_v17 = vpop.eup %234 }
 0x114   :  { %v128_v18 = vadd.f32 1.0, %v235_v17 }
 0x115   :  { %v237_v19 = vpop.eup %236 }
 0x116   :  { %v129_v22 = vadd.f32 1.0, %v237_v19  ;;  %v130_v23 = vmul.f32 %v128_v18, %v121_v20 }
 0x118   :  { %v131_v24 = vmul.f32 %v129_v22, %v122_v21 }
 0x11a   :  { %v133_v25 = vpack.c.bf16 %v131_v24, %v130_v23 }
 0x11c   :  { %216 = vmatpush3.bf16.xpose.msra.mxu1 %v133_v25 }
 0x123   :  { %218 = vmatmul.mubr.bf16.vlgmr.msra.gmra.mrb[0].mxu1 %v132_v26 }
 0x1f6   :  { %v174_v28 = vpop.f32.mrb[0].mxu1 }
 0x1f7   :  { %v175_v29 = vadd.f32 %v174_v28, %v138_v27  ;;  %v219_v30 = vpop.f32.mrb[1].mxu1 }
 0x1f8   :  { %v177_v31 = vpop.f32.mrb[2].mxu1 }
 0x1f9   :  { %v220_v32 = vpop.f32.mrb[3].mxu1  ;;  %181 = vst.msk [vmem:[#allocation7] sm:$0xff] %vm180_vm2, %v175_v29 }
 0x1fa   :  { %293 = shalt.err (!%p290_p6)
}
 0x1fb   :  { %s294_s27 = scalar_lea.hbm %s400_s5, 128 }
 0x1fc   :  { %p295_p7 = scmp.ne.s32.totalorder %s400_s5, %s294_s27  ;;  %p298_p8 = scmp.lt.u32.totalorder %s294_s27, %s400_s5 }
 0x1fe   :  { %p300_p9 = pnand %p298_p8, %p295_p7 }
 0x200   :  { %303 = shalt.err (!%p300_p9)
}
 0x201   :  { %191 = dma.vmem_to_hbm [thread:$0]  %s189_s24, 128, %s400_s5, [#allocation4]  }
 0x202   :  { %308 = dma.done.wait [#allocation4], 128  }
 0x203   :  { %309 = vsyncadd [#allocation4], 4294967168 }
 0x204   :  { %195 = vsyncpa [#allocation3], 1 }
 0x205   :  { %196 = vsyncpa [#allocation6], 1 }
 0x206   :  { %197 = vsyncpa [#allocation4], 1 }

</bundles_post_ra>
